<compile_context>
chip_gen: v7x
topology: tpu7x:2x2x1
jax: 0.10.0
libtpu: 0.0.40
codegen_flags: <defaults>
</compile_context>

<pallas_src>
import functools

import jax
import jax.numpy as jnp
from jax.experimental import pallas as pl
from jax.experimental.pallas import tpu as pltpu


def _round_up(x, m):
    return ((x + m - 1) // m) * m


# ----------------------------- fused ANN kernel -----------------------------

def _ann_fused_kernel(*refs, n_layers, tile_k, k_valid, w0_resident,
                      compute_dtype):
    """One (row-tile, K-tile) grid step of the fused ANN forward."""
    if n_layers > 1:
        x_ref, w0_ref, b0_ref, wf_ref, bf_ref, o_ref, acc_ref = refs
    else:
        x_ref, w0_ref, b0_ref, o_ref, acc_ref = refs
        wf_ref = bf_ref = None

    k = pl.program_id(1)
    n_k = pl.num_programs(1)

    @pl.when(k == 0)
    def _():
        acc_ref[...] = jnp.zeros_like(acc_ref)

    # Stream x in its original dtype; zero the ragged K edge (stale/garbage
    # columns of a partial block) and cast to bf16 per tile on the VPU.
    x_t = x_ref[...]
    if k_valid % tile_k != 0:                       # static: only if K is ragged
        col = jax.lax.broadcasted_iota(jnp.int32, x_t.shape, 1)
        x_t = jnp.where(k * tile_k + col < k_valid, x_t, jnp.zeros_like(x_t))
    x_t = x_t.astype(compute_dtype)

    if w0_resident:
        # w0 lives fully in VMEM (fetched from HBM once); slice the K tile.
        start = pl.multiple_of(k * tile_k, tile_k)
        w0 = w0_ref[pl.ds(start, tile_k), :]
    else:
        w0 = w0_ref[...]

    # fc0 partial product: bf16 x bf16 -> f32 accumulation on the MXU.
    acc_ref[...] += jnp.dot(x_t, w0, preferred_element_type=jnp.float32)

    @pl.when(k == n_k - 1)
    def _():
        acc_ref[...] = acc_ref[...] + b0_ref[...]            # fc0 bias (f32)
        if n_layers > 1:
            w_fc = wf_ref[...]                                # resident in VMEM
            b_fc = jnp.broadcast_to(bf_ref[...], acc_ref.shape)  # hoisted bcast
            for _ in range(n_layers - 1):                     # static unroll
                # fc(dropout(relu(y))) with eval-mode dropout (= identity);
                # write back into the VMEM accumulator to bound vreg pressure.
                h = jnp.maximum(acc_ref[...], 0.0).astype(w_fc.dtype)
                acc_ref[...] = (jnp.dot(h, w_fc,
                                        preferred_element_type=jnp.float32)
                                + b_fc)
        o_ref[...] = acc_ref[...].astype(o_ref.dtype)


# ------------------------------ host wrapper --------------------------------

def ann_forward(x, params, n_ANNlayers=1, *, tile_m=512, tile_k=2048,
                compute_dtype=jnp.bfloat16, out_dtype=jnp.float32,
                w0_resident_max_bytes=16 * 1024 * 1024,
                vmem_budget_bytes=40 * 1024 * 1024):
    """Fused Pallas implementation of ANN.forward (eval-mode dropout)."""
    orig_shape = x.shape
    K = orig_shape[-1]
    x2 = x.reshape(-1, K)
    M = x2.shape[0]

    K_w_in, R = params["fc0_w_t"].shape
    assert K == K_w_in and params["fc_w_t"].shape == (R, R)

    c_isz = jnp.dtype(compute_dtype).itemsize
    x_isz = jnp.dtype(x2.dtype).itemsize
    o_isz = jnp.dtype(out_dtype).itemsize

    R_pad = _round_up(R, 128)

    # ---- tile_k: multiple of 128, no larger than the (128-padded) K extent ----
    tile_k = max(128, _round_up(tile_k, 128))
    tile_k = min(tile_k, _round_up(K, 128))

    # ---- tile_m: sublane friendly; keep >=2 row tiles for megacore sharding ----
    sub = 16
    if M <= sub:
        tile_m = M                                   # block dim == full dim
    else:
        tile_m = min(max(sub, _round_up(tile_m, sub)), _round_up(M, sub))
        if pl.cdiv(M, tile_m) < 2:
            tile_m = max(sub, _round_up(pl.cdiv(M, 2), sub))

    # ---- fc0-weight residency decision + VMEM budgeting (v7x: 64 MiB phys) ----
    w0_resident = _round_up(K, 128) * R_pad * c_isz <= w0_resident_max_bytes

    def footprint(tk, resident):
        w0_rows = _round_up(K, tk) if resident else tk
        return (2 * tile_m * tk * x_isz            # x tiles (double-buffered)
                + 2 * w0_rows * R_pad * c_isz      # fc0 weight (conservative 2x)
                + 2 * R_pad * R_pad * c_isz        # fc weight
                + 4 * 2 * R_pad * 4                # biases
                + 2 * tile_m * R_pad * o_isz       # output tiles
                + tile_m * R_pad * 4)              # f32 accumulator scratch

    while footprint(tile_k, w0_resident) > vmem_budget_bytes and tile_k > 128:
        tile_k = max(128, (tile_k // 2) // 128 * 128)
    if w0_resident and footprint(tile_k, w0_resident) > vmem_budget_bytes:
        w0_resident = False

    K_w = _round_up(K, tile_k)
    n_k = K_w // tile_k
    m_tiles = pl.cdiv(M, tile_m)

    # ---- pad/cast only the (small) parameters; x itself is never copied ----
    # (In production, do this once at init and reuse.)
    w0_p = jnp.pad(params["fc0_w_t"],
                   ((0, K_w - K), (0, R_pad - R))).astype(compute_dtype)
    b0_p = jnp.pad(params["fc0_b"], ((0, 0), (0, R_pad - R))).astype(jnp.float32)

    x_spec = pl.BlockSpec((tile_m, tile_k), lambda i, kk: (i, kk))
    if w0_resident:
        w0_spec = pl.BlockSpec((K_w, R_pad), lambda i, kk: (0, 0))  # fetched once
    else:
        w0_spec = pl.BlockSpec((tile_k, R_pad), lambda i, kk: (kk, 0))
    bias_spec = pl.BlockSpec((1, R_pad), lambda i, kk: (0, 0))

    inputs = [x2, w0_p, b0_p]
    in_specs = [x_spec, w0_spec, bias_spec]
    wf_bytes = 0
    if n_ANNlayers > 1:
        wf_p = jnp.pad(params["fc_w_t"],
                       ((0, R_pad - R), (0, R_pad - R))).astype(compute_dtype)
        bf_p = jnp.pad(params["fc_b"], ((0, 0), (0, R_pad - R))).astype(jnp.float32)
        inputs += [wf_p, bf_p]
        in_specs += [pl.BlockSpec((R_pad, R_pad), lambda i, kk: (0, 0)), bias_spec]
        wf_bytes = wf_p.size * c_isz + bf_p.size * 4

    kernel = functools.partial(
        _ann_fused_kernel, n_layers=n_ANNlayers, tile_k=tile_k, k_valid=K,
        w0_resident=w0_resident, compute_dtype=compute_dtype)

    # Actual HBM traffic: x read once, w0 read once when resident (else once
    # per row tile), small weights/biases once, lane-dense output write.
    flops = (2 * M * K_w * R_pad
             + 2 * max(n_ANNlayers - 1, 0) * M * R_pad * R_pad)
    w0_reads = 1 if w0_resident else m_tiles
    bytes_accessed = int(M * K * x_isz
                         + w0_reads * w0_p.size * c_isz
                         + b0_p.size * 4 + wf_bytes
                         + M * R_pad * o_isz)

    vmem_limit = int(max(32 << 20,
                         min(footprint(tile_k, w0_resident) * 5 // 4 + (4 << 20),
                             64 << 20)))

    out_pad = pl.pallas_call(
        kernel,
        out_shape=jax.ShapeDtypeStruct((M, R_pad), out_dtype),
        grid_spec=pltpu.PrefetchScalarGridSpec(
            num_scalar_prefetch=0,
            grid=(m_tiles, n_k),                    # K (reduction) innermost
            in_specs=in_specs,
            out_specs=pl.BlockSpec((tile_m, R_pad), lambda i, kk: (i, 0)),
            scratch_shapes=[pltpu.VMEM((tile_m, R_pad), jnp.float32)],
        ),
        compiler_params=pltpu.CompilerParams(
            dimension_semantics=("parallel", "arbitrary"),
            vmem_limit_bytes=vmem_limit,
        ),
        cost_estimate=pl.CostEstimate(flops=flops, transcendentals=0,
                                      bytes_accessed=bytes_accessed),
    )(*inputs)

    out = out_pad[:, :R]
    return out.reshape(*orig_shape[:-1], R)


# ------------------------------ params & reference --------------------------

def init_ann_params(key, input_size, reduced_size, dtype=jnp.float32):
    """Deterministic init mimicking nn.Linear's U(-1/sqrt(fan_in), 1/sqrt(fan_in))."""
    k0, k1, k2, k3 = jax.random.split(key, 4)
    lim0 = 1.0 / jnp.sqrt(jnp.array(input_size, jnp.float32))
    lim1 = 1.0 / jnp.sqrt(jnp.array(reduced_size, jnp.float32))
    return {
        # stored already transposed: [in, out]
        "fc0_w_t": jax.random.uniform(k0, (input_size, reduced_size),
                                      dtype, -lim0, lim0),
        "fc0_b":   jax.random.uniform(k1, (1, reduced_size), dtype, -lim0, lim0),
        "fc_w_t":  jax.random.uniform(k2, (reduced_size, reduced_size),
                                      dtype, -lim1, lim1),
        "fc_b":    jax.random.uniform(k3, (1, reduced_size), dtype, -lim1, lim1),
    }


def ann_reference(x, params, n_ANNlayers=1, compute_dtype=jnp.bfloat16):
    """Plain-JAX reference in matching (bf16-in / f32-acc) precision."""
    w0 = params["fc0_w_t"].astype(compute_dtype)
    wf = params["fc_w_t"].astype(compute_dtype)
    y = jnp.dot(x.astype(compute_dtype), w0,
                preferred_element_type=jnp.float32) + params["fc0_b"]
    for _ in range(n_ANNlayers - 1):
        h = jnp.maximum(y, 0.0).astype(compute_dtype)
        y = jnp.dot(h, wf, preferred_element_type=jnp.float32) + params["fc_b"]
    return y


# --------------------------------- main --------------------------------------

if __name__ == "__main__":
    # Small shapes consistent with the module (scaled down from 8192 / 248),
    # chosen so the kernel exercises row tiling (3 x 16-row tiles), a 2-step
    # K reduction with ragged-K masking (192 % 128 != 0), feature padding
    # (R=96 -> 128 lanes), the resident-w0 path and the fused multi-layer
    # relu->fc epilogue.
    INPUT_SIZE = 192
    REDUCED_SIZE = 96
    BATCH = 48
    N_ANNLAYERS = 3

    key = jax.random.PRNGKey(0)
    k_param, k_x = jax.random.split(key)

    params = init_ann_params(k_param, INPUT_SIZE, REDUCED_SIZE)
    x = jax.random.normal(k_x, (BATCH, INPUT_SIZE), jnp.float32)

    out = ann_forward(x, params, n_ANNlayers=N_ANNLAYERS, tile_m=16, tile_k=128)
    out = jax.block_until_ready(out)
    ref = ann_reference(x, params, n_ANNlayers=N_ANNLAYERS)
    assert out.shape == (BATCH, REDUCED_SIZE)
    assert bool(jnp.allclose(out, ref, atol=2e-2, rtol=2e-2)), "Pallas != reference"

    # Also exercise the default-tile path (auto-clamped tiles, >=2 row tiles,
    # single K step) and the n_ANNlayers == 1 variant (fc weights not passed).
    out1 = jax.block_until_ready(ann_forward(x, params, n_ANNlayers=1))
    ref1 = ann_reference(x, params, n_ANNlayers=1)
    assert out1.shape == (BATCH, REDUCED_SIZE)
    assert bool(jnp.allclose(out1, ref1, atol=2e-2, rtol=2e-2)), \
        "Pallas != reference (1 layer)"

    print("KERNEL_OK")
</pallas_src>

<mosaic_0001>
module attributes {stable_mosaic.version = 11 : i64} {
  func.func @_ann_fused_kernel(%arg0: i32, %arg1: i32, %arg2: memref<16x128xf32, #tpu.memory_space<vmem>>, %arg3: memref<256x128xbf16, #tpu.memory_space<vmem>>, %arg4: memref<1x128xf32, #tpu.memory_space<vmem>>, %arg5: memref<128x128xbf16, #tpu.memory_space<vmem>>, %arg6: memref<1x128xf32, #tpu.memory_space<vmem>>, %arg7: memref<16x128xf32, #tpu.memory_space<vmem>>, %arg8: memref<16x128xf32, #tpu.memory_space<vmem>>) attributes {dimension_semantics = [#tpu.dimension_semantics<parallel>, #tpu.dimension_semantics<arbitrary>], iteration_bounds = array<i64: 3, 2>, scalar_prefetch = 0 : i64, scratch_operands = 1 : i64, tpu.core_type = #tpu.core_type<tc>, window_params = [{transform_indices = @transform_0, window_bounds = array<i64: 16, 128>}, {pipeline_mode = #tpu.pipeline_mode<synchronous>, transform_indices = @transform_1, window_bounds = array<i64: 256, 128>}, {pipeline_mode = #tpu.pipeline_mode<synchronous>, transform_indices = @transform_2, window_bounds = array<i64: 1, 128>}, {pipeline_mode = #tpu.pipeline_mode<synchronous>, transform_indices = @transform_3, window_bounds = array<i64: 128, 128>}, {pipeline_mode = #tpu.pipeline_mode<synchronous>, transform_indices = @transform_4, window_bounds = array<i64: 1, 128>}, {transform_indices = @transform_5, window_bounds = array<i64: 16, 128>}]} {
    %c0_i32 = arith.constant 0 : i32
    %0 = arith.cmpi eq, %arg1, %c0_i32 : i32
    %1 = arith.extui %0 : i1 to i32
    %c0_i32_0 = arith.constant 0 : i32
    %2 = arith.cmpi ne, %1, %c0_i32_0 : i32
    scf.if %2 {
      %cst_10 = arith.constant 0.000000e+00 : f32
      %24 = vector.broadcast %cst_10 : f32 to vector<16x128xf32>
      %c0_11 = arith.constant 0 : index
      %c0_12 = arith.constant 0 : index
      %25 = vector.load %arg8[%c0_11, %c0_12] : memref<16x128xf32, #tpu.memory_space<vmem>>, vector<16x128xf32>
      tpu.vector_store %arg8[%c0_11, %c0_12], %24 {strides = array<i32>} : memref<16x128xf32, #tpu.memory_space<vmem>>, vector<16x128xf32>,
    } else {
    }
    %c0 = arith.constant 0 : index
    %c0_1 = arith.constant 0 : index
    %3 = vector.load %arg2[%c0, %c0_1] : memref<16x128xf32, #tpu.memory_space<vmem>>, vector<16x128xf32>
    %4 = tpu.iota {dimensions = array<i32: 1>} : vector<16x128xi32>
    %c128_i32 = arith.constant 128 : i32
    %5 = arith.muli %arg1, %c128_i32 : i32
    %6 = vector.broadcast %5 : i32 to vector<16x128xi32>
    %7 = arith.addi %6, %4 : vector<16x128xi32>
    %c192_i32 = arith.constant 192 : i32
    %8 = vector.broadcast %c192_i32 : i32 to vector<16x128xi32>
    %9 = arith.cmpi slt, %7, %8 : vector<16x128xi32>
    %cst = arith.constant 0.000000e+00 : f32
    %10 = vector.broadcast %cst : f32 to vector<16x128xf32>
    %11 = arith.select %9, %3, %10 : vector<16x128xi1>, vector<16x128xf32>
    %12 = arith.truncf %11 : vector<16x128xf32> to vector<16x128xbf16>
    %c128_i32_2 = arith.constant 128 : i32
    %13 = arith.muli %arg1, %c128_i32_2 : i32
    %14 = tpu.assume_multiple %13, 128 : i32
    %15 = arith.index_cast %14 : i32 to index
    %c0_3 = arith.constant 0 : index
    %16 = vector.load %arg3[%15, %c0_3] : memref<256x128xbf16, #tpu.memory_space<vmem>>, vector<128x128xbf16>
    %c0_4 = arith.constant 0 : index
    %c0_5 = arith.constant 0 : index
    %17 = vector.load %arg8[%c0_4, %c0_5] : memref<16x128xf32, #tpu.memory_space<vmem>>, vector<16x128xf32>
    %cst_6 = arith.constant dense<0.000000e+00> : vector<16x128xf32>
    %18 = tpu.matmul %12, %16, %cst_6 {dimension_numbers = #tpu.dot_dimension_numbers<[1], [0], [0], [1], [0, 0, 1, 1], [], []>} : vector<16x128xbf16>, vector<128x128xbf16>, vector<16x128xf32> -> vector<16x128xf32>
    %19 = arith.addf %17, %18 : vector<16x128xf32>
    %c0_7 = arith.constant 0 : index
    %c0_8 = arith.constant 0 : index
    %20 = vector.load %arg8[%c0_7, %c0_8] : memref<16x128xf32, #tpu.memory_space<vmem>>, vector<16x128xf32>
    tpu.vector_store %arg8[%c0_7, %c0_8], %19 {strides = array<i32>} : memref<16x128xf32, #tpu.memory_space<vmem>>, vector<16x128xf32>,
    %c1_i32 = arith.constant 1 : i32
    %21 = arith.cmpi eq, %arg1, %c1_i32 : i32
    %22 = arith.extui %21 : i1 to i32
    %c0_i32_9 = arith.constant 0 : i32
    %23 = arith.cmpi ne, %22, %c0_i32_9 : i32
    scf.if %23 {
      %c0_10 = arith.constant 0 : index
      %c0_11 = arith.constant 0 : index
      %24 = vector.load %arg8[%c0_10, %c0_11] : memref<16x128xf32, #tpu.memory_space<vmem>>, vector<16x128xf32>
      %c0_12 = arith.constant 0 : index
      %c0_13 = arith.constant 0 : index
      %25 = vector.load %arg4[%c0_12, %c0_13] : memref<1x128xf32, #tpu.memory_space<vmem>>, vector<1x128xf32>
      %26 = vector.broadcast %25 : vector<1x128xf32> to vector<16x128xf32>
      %27 = arith.addf %24, %26 : vector<16x128xf32>
      %c0_14 = arith.constant 0 : index
      %c0_15 = arith.constant 0 : index
      %28 = vector.load %arg8[%c0_14, %c0_15] : memref<16x128xf32, #tpu.memory_space<vmem>>, vector<16x128xf32>
      tpu.vector_store %arg8[%c0_14, %c0_15], %27 {strides = array<i32>} : memref<16x128xf32, #tpu.memory_space<vmem>>, vector<16x128xf32>,
      %c0_16 = arith.constant 0 : index
      %c0_17 = arith.constant 0 : index
      %29 = vector.load %arg5[%c0_16, %c0_17] : memref<128x128xbf16, #tpu.memory_space<vmem>>, vector<128x128xbf16>
      %c0_18 = arith.constant 0 : index
      %c0_19 = arith.constant 0 : index
      %30 = vector.load %arg6[%c0_18, %c0_19] : memref<1x128xf32, #tpu.memory_space<vmem>>, vector<1x128xf32>
      %31 = vector.shape_cast %30 : vector<1x128xf32> to vector<1x128xf32>
      %32 = vector.broadcast %31 : vector<1x128xf32> to vector<16x128xf32>
      %c0_20 = arith.constant 0 : index
      %c0_21 = arith.constant 0 : index
      %33 = vector.load %arg8[%c0_20, %c0_21] : memref<16x128xf32, #tpu.memory_space<vmem>>, vector<16x128xf32>
      %cst_22 = arith.constant 0.000000e+00 : f32
      %34 = vector.broadcast %cst_22 : f32 to vector<16x128xf32>
      %35 = arith.maximumf %33, %34 : vector<16x128xf32>
      %36 = arith.truncf %35 : vector<16x128xf32> to vector<16x128xbf16>
      %cst_23 = arith.constant dense<0.000000e+00> : vector<16x128xf32>
      %37 = tpu.matmul %36, %29, %cst_23 {dimension_numbers = #tpu.dot_dimension_numbers<[1], [0], [0], [1], [0, 0, 1, 1], [], []>} : vector<16x128xbf16>, vector<128x128xbf16>, vector<16x128xf32> -> vector<16x128xf32>
      %38 = arith.addf %37, %32 : vector<16x128xf32>
      %c0_24 = arith.constant 0 : index
      %c0_25 = arith.constant 0 : index
      %39 = vector.load %arg8[%c0_24, %c0_25] : memref<16x128xf32, #tpu.memory_space<vmem>>, vector<16x128xf32>
      tpu.vector_store %arg8[%c0_24, %c0_25], %38 {strides = array<i32>} : memref<16x128xf32, #tpu.memory_space<vmem>>, vector<16x128xf32>,
      %c0_26 = arith.constant 0 : index
      %c0_27 = arith.constant 0 : index
      %40 = vector.load %arg8[%c0_26, %c0_27] : memref<16x128xf32, #tpu.memory_space<vmem>>, vector<16x128xf32>
      %cst_28 = arith.constant 0.000000e+00 : f32
      %41 = vector.broadcast %cst_28 : f32 to vector<16x128xf32>
      %42 = arith.maximumf %40, %41 : vector<16x128xf32>
      %43 = arith.truncf %42 : vector<16x128xf32> to vector<16x128xbf16>
      %cst_29 = arith.constant dense<0.000000e+00> : vector<16x128xf32>
      %44 = tpu.matmul %43, %29, %cst_29 {dimension_numbers = #tpu.dot_dimension_numbers<[1], [0], [0], [1], [0, 0, 1, 1], [], []>} : vector<16x128xbf16>, vector<128x128xbf16>, vector<16x128xf32> -> vector<16x128xf32>
      %45 = arith.addf %44, %32 : vector<16x128xf32>
      %c0_30 = arith.constant 0 : index
      %c0_31 = arith.constant 0 : index
      %46 = vector.load %arg8[%c0_30, %c0_31] : memref<16x128xf32, #tpu.memory_space<vmem>>, vector<16x128xf32>
      tpu.vector_store %arg8[%c0_30, %c0_31], %45 {strides = array<i32>} : memref<16x128xf32, #tpu.memory_space<vmem>>, vector<16x128xf32>,
      %c0_32 = arith.constant 0 : index
      %c0_33 = arith.constant 0 : index
      %47 = vector.load %arg8[%c0_32, %c0_33] : memref<16x128xf32, #tpu.memory_space<vmem>>, vector<16x128xf32>
      %c0_34 = arith.constant 0 : index
      %c0_35 = arith.constant 0 : index
      %48 = vector.load %arg7[%c0_34, %c0_35] : memref<16x128xf32, #tpu.memory_space<vmem>>, vector<16x128xf32>
      tpu.vector_store %arg7[%c0_34, %c0_35], %47 {strides = array<i32>} : memref<16x128xf32, #tpu.memory_space<vmem>>, vector<16x128xf32>,
    } else {
    }
    return
  }
  func.func @transform_0(%arg0: i32, %arg1: i32) -> (i32, i32) {
    %c0_i32 = arith.constant 0 : i32
    return %arg0, %arg1 : i32, i32
  }
  func.func @transform_1(%arg0: i32, %arg1: i32) -> (i32, i32) {
    %c0_i32 = arith.constant 0 : i32
    %c0_i32_0 = arith.constant 0 : i32
    %c0_i32_1 = arith.constant 0 : i32
    return %c0_i32, %c0_i32_0 : i32, i32
  }
  func.func @transform_2(%arg0: i32, %arg1: i32) -> (i32, i32) {
    %c0_i32 = arith.constant 0 : i32
    %c0_i32_0 = arith.constant 0 : i32
    %c0_i32_1 = arith.constant 0 : i32
    return %c0_i32, %c0_i32_0 : i32, i32
  }
  func.func @transform_3(%arg0: i32, %arg1: i32) -> (i32, i32) {
    %c0_i32 = arith.constant 0 : i32
    %c0_i32_0 = arith.constant 0 : i32
    %c0_i32_1 = arith.constant 0 : i32
    return %c0_i32, %c0_i32_0 : i32, i32
  }
  func.func @transform_4(%arg0: i32, %arg1: i32) -> (i32, i32) {
    %c0_i32 = arith.constant 0 : i32
    %c0_i32_0 = arith.constant 0 : i32
    %c0_i32_1 = arith.constant 0 : i32
    return %c0_i32, %c0_i32_0 : i32, i32
  }
  func.func @transform_5(%arg0: i32, %arg1: i32) -> (i32, i32) {
    %c0_i32 = arith.constant 0 : i32
    %c0_i32_0 = arith.constant 0 : i32
    return %arg0, %c0_i32 : i32, i32
  }
}

</mosaic_0001>

<bundles_post_ra>
// kernel: tpu_custom_call.1
= control target key start
LH: loop header
LB: loop body
LE: loop exit
PB: predicated region body
PF: predicated region fallthrough
CT: control target
= control target key end

     0   :  { %s1606_s0 = inlined_call_operand.hbm [shape: f32[48,192], index: 0, kind: input, shape index: {}]   ;;  %s1607_s1 = inlined_call_operand.hbm [shape: bf16[256,128], index: 1, kind: input, shape index: {}]   ;;  %s1608_s2 = inlined_call_operand.vmem [shape: f32[1,128], index: 2, kind: input, shape index: {}]   ;;  %s1609_s3 = inlined_call_operand.hbm [shape: bf16[128,128], index: 3, kind: input, shape index: {}]   ;;  %s1610_s4 = inlined_call_operand.vmem [shape: f32[1,128], index: 4, kind: input, shape index: {}]   ;;  %s1611_s5 = inlined_call_operand.hbm [shape: f32[48,128], index: 5, kind: output, shape index: {}]  }
   0x1   :  { %1623 = sst [smem:[#allocation17_spill]] %s1607_s1 }
   0x2   :  { %1624 = sst [smem:[#allocation18_spill]] %s1609_s3 }
   0x3   :  { %1625 = sst [smem:[#allocation19_spill]] %s1611_s5 }
   0x4   :  { %10 = vsyncpa [#allocation4], 0 }
   0x5   :  { %12 = vsyncpa [#allocation4 + $0x1], 0 }
   0x6   :  { %13 = vsyncpa [#allocation7], 0 }
   0x7   :  { %14 = vsyncpa [#allocation5], 0 }
   0x8   :  { %16 = vsyncpa [#allocation5 + $0x1], 0  ;;  %s1277_s18 = smov 0   ;;  %s1279_s19 = smov 0  }
   0x9   :  { %s1281_s20 = smov 0   ;;  %s1283_s21 = smov 0  }
   0xa   :  { %s1285_s22 = smov 0   ;;  %s1287_s23 = smov 0  }
   0xb   :  { %s1289_s24 = smov 0   ;;  %s1291_s25 = smov 0  }
   0xc   :  { %s1293_s26 = smov 0   ;;  %s1295_s27 = smov 0  }
   0xd   :  { %s1297_s28 = smov 0  }
   0xe LB: > { %1626 = sst [smem:[#allocation13_spill]] %s1189_s18  ;;  %s732_s29 = sadd.s32 4294967295, %s1229_s28   ;;  %s1229_s28 = sphi %s1297_s28, %s22_s28   ;;  %s1225_s27 = sphi %s1295_s27, %s1660_s27   ;;  %s1221_s26 = sphi %s1293_s26, %s1659_s26   ;;  %s1217_s25 = sphi %s1291_s25, %s1658_s25   ;;  %s1213_s24 = sphi %s1289_s24, %s1657_s24   ;;  %s1209_s23 = sphi %s1287_s23, %s1656_s23   ;;  %s1205_s22 = sphi %s1285_s22, %s1655_s22   ;;  %s1201_s21 = sphi %s1283_s21, %s1654_s21   ;;  %s1197_s20 = sphi %s1281_s20, %s1653_s20   ;;  %s1193_s19 = sphi %s1279_s19, %s1652_s19   ;;  %s1189_s18 = sphi %s1277_s18, %s1651_s18  }
   0xf   : > { %1627 = sst [smem:[#allocation14_spill]] %s1229_s28  ;;  %s733_s30 = sadd.s32 4294967294, %s1229_s28  }
  0x10   : > { %p50_p0 = scmp.ne.s32.totalorder %s1209_s23, %s1205_s22  ;;  %p51_p1 = scmp.eq.s32.totalorder %s1229_s28, 0 }
  0x11   : > { %p56_p2 = scmp.ne.s32.totalorder %s1205_s22, %s1201_s21  ;;  %p1337_p3 = scmp.eq.s32.totalorder %s732_s29, 0 }
  0x12   : > { %p1342_p4 = por %p51_p1, %p50_p0  ;;  %p163_p5 = scmp.ne.s32.totalorder %s1197_s20, %s1193_s19 }
  0x13   : > { %s1628_s7 = scalar_select %p1337_p3, 1, 0 }
  0x14   : > { %p1350_p6 = por %p1337_p3, %p56_p2  ;;  %p164_p7 = scmp.eq.s32.totalorder %s732_s29, 5 }
  0x15   : > { %p169_p8 = scmp.ne.s32.totalorder %s1193_s19, %s1189_s18  ;;  %p170_p9 = scmp.eq.s32.totalorder %s733_s30, 5 }
  0x16   : > { %s1630_s10 = scalar_select %p1350_p6, 1, 0 }
  0x17   : > { %p1356_p10 = por %p164_p7, %p163_p5  ;;  %p734_p11 = scmp.ge.s32.totalorder %s1229_s28, 1 }
  0x18   : > { %p1361_p12 = por %p170_p9, %p169_p8  ;;  %p177_p13 = scmp.lt.s32.totalorder %s1229_s28, 7 }
  0x19   : > { %s1631_s11 = scalar_select %p1356_p10, 1, 0 }
  0x1a   : > { %s1633_s12 = scalar_select %p1361_p12, 1, 0 }
  0x1b   : > { %1632 = sst [smem:[#allocation15_spill]] %s1631_s11  ;;  %p1366_p0 = pnand %p734_p11, %p177_p13 }
  0x1c   : > { %1634 = sst [smem:[#allocation16_spill]] %s1633_s12  ;;  %s1231_s14 = smov [#allocation6]  }
  0x1d   : > { %s189_s15 = sshll.u32 %s1231_s14, 4  ;;  %p878_p1 = pneg %p1366_p0  ;;  %s1370_s15 = int_to_ptr.vmem [resolvable:$true] %s189_s15 }
  0x1e   : > { %p895_p2 = scmp.lt.s32.totalorder %s1229_s28, 6  ;;  %s1232_s21 = smov [#allocation8]  }
  0x1f   : > { %p1377_p5 = pnand %p878_p1, %p1337_p3  ;;  %s205_s29 = sshll.u32 %s1232_s21, 4  ;;  %s1387_s29 = int_to_ptr.vmem [resolvable:$true] %s205_s29 }
  0x20   : > { %p1383_p7 = pnand %p895_p2, %p1342_p4  ;;  %s1638_s1 = sld [smem:[#allocation17_spill]] }
  0x21   : > { %p1019_p9 = pneg %p1377_p5 }
  0x26   : > { %s1017_s6 = scalar_lea.hbm %s1638_s1, 2048 }
  0x27   : > { %p1018_p8 = scmp.ne.s32.totalorder %s1638_s1, %s1017_s6  ;;  %p1024_p13 = scmp.lt.u32.totalorder %s1017_s6, %s1638_s1 }
  0x29   : > { %p1020_p4 = pnand %p1019_p9, %p1018_p8 }
  0x2b   : > { %p1021_p11 = pneg %p1020_p4 }
  0x2d   : > { %p1026_p1 = pnand %p1024_p13, %p1021_p11 }
  0x2f   : > { %1029 = shalt.err (!%p1026_p1)
}
  0x30   : > { %s1030_s21 = scalar_lea.vmem %s1370_s15, 2048  ;;  %p1038_p3 = scmp.lt.s32.totalorder %s1370_s15, %s1370_s15 }
  0x31   : > { %p1031_p2 = scmp.ne.s32.totalorder %s1370_s15, %s1030_s21  ;;  %p1039_p8 = scmp.lt.s32.totalorder %s1030_s21, %s1030_s21 }
  0x33   : > { %p1033_p12 = pnand %p1031_p2, %p1019_p9  ;;  %p1040_p4 = por %p1039_p8, %p1038_p3 }
  0x35   : > { %p1034_p10 = pneg %p1033_p12 }
  0x37   : > { %p1041_p6 = pnand %p1040_p4, %p1034_p10 }
  0x39   : > { %1044 = shalt.err (!%p1041_p6)
}
  0x3a   : > { %s1233_s18 = smov 64   ;;  %s1234_s6 = smov 4  }
  0x3b   : > { %881 = dma.hbm_to_vmem [thread:$0]  (!%p1377_p5), %s1638_s1, 2048, %s1370_s15, [#allocation7], %s1233_s18, %s1233_s18, %s1234_s6  }
  0x3c   : > { %s1639_s3 = sld [smem:[#allocation18_spill]] }
  0x42   : > { %s1045_s9 = scalar_lea.hbm %s1639_s3, 1024 }
  0x43   : > { %p1046_p3 = scmp.ne.s32.totalorder %s1639_s3, %s1045_s9  ;;  %p1052_p12 = scmp.lt.u32.totalorder %s1045_s9, %s1639_s3 }
  0x45   : > { %p1048_p6 = pnand %p1046_p3, %p1019_p9 }
  0x47   : > { %p1049_p10 = pneg %p1048_p6 }
  0x49   : > { %p1054_p11 = pnand %p1052_p12, %p1049_p10 }
  0x4b   : > { %1057 = shalt.err (!%p1054_p11)
}
  0x4c   : > { %s1058_s15 = scalar_lea.vmem %s1387_s29, 1024  ;;  %p1066_p8 = scmp.lt.s32.totalorder %s1387_s29, %s1387_s29 }
  0x4d   : > { %p1059_p13 = scmp.ne.s32.totalorder %s1387_s29, %s1058_s15  ;;  %p1067_p4 = scmp.lt.s32.totalorder %s1058_s15, %s1058_s15 }
  0x4f   : > { %p1061_p1 = pnand %p1059_p13, %p1019_p9  ;;  %p1068_p3 = por %p1067_p4, %p1066_p8 }
  0x51   : > { %p1062_p2 = pneg %p1061_p1 }
  0x53   : > { %p1069_p6 = pnand %p1068_p3, %p1062_p2 }
  0x55   : > { %1072 = shalt.err (!%p1069_p6)
}
  0x56   : > { %884 = dma.hbm_to_vmem [thread:$0]  (!%p1377_p5), %s1639_s3, 1024, %s1387_s29, [#allocation7], %s1233_s18, %s1233_s18, %s1234_s6  }
  0x57   : > { %s31_s11 = sadd.s32 1, %s1221_s26  ;;  %s34_s8 = sadd.s32 1, %s1225_s27 }
  0x58   : > { %p32_p9 = scmp.ge.s32.totalorder %s31_s11, 2  ;;  %s222_s12 = sand.u32 1, %s1209_s23  }
  0x59   : > { %s777_s30 = sshll.u32 %s1225_s27, 2  ;;  %s738_s14 = sshll.u32 %s222_s12, 4 }
  0x5a   : > { %s1662_s11 = smov (%p32_p9, %s31_s11), 0  ;;  %s1664_s8 = smov (!%p32_p9, %s34_s8), %s1225_s27 }
  0x5b   : > { %s39_s16 = ssub.s32 %s1221_s26, %s1662_s11  ;;  %p36_p10 = scmp.ge.s32.totalorder %s1664_s8, 3 }
  0x5c   : > { %s232_s9 = sadd.s32 %s1221_s26, %s777_s30  ;;  %s226_s18 = scalar_lea.vmem [#allocation3], %s738_s14 }
  0x5d   : > { %s1666_s8 = smov (%p36_p10, %s1664_s8), 0  ;;  %s741_s29 = sshll.u32 %s232_s9, 7 }
  0x5e   : > { %s235_s6 = sshll.u32 %s226_s18, 4  ;;  %s38_s21 = ssub.s32 %s1225_s27, %s1666_s8  ;;  %s1460_s6 = int_to_ptr.vmem [resolvable:$true] %s235_s6 }
  0x5f   : > { %s1458_s28 = scalar_lea.hbm %s1606_s0, %s741_s29  ;;  %s40_s1 = sor.u32 %s39_s16, %s38_s21 }
  0x60   : > { %p151_p5 = scmp.eq.s32.totalorder %s38_s21, 0  ;;  %p41_p12 = scmp.eq.s32.totalorder %s40_s1, 0 }
  0x61   : > { %s1640_s30 = sadd.s32 1, %s1197_s20  ;;  %s1641_s14 = sadd.s32 1, %s1209_s23 }
  0x62   : > { %s1465_s3 = scalar_select %p151_p5, %s1197_s20, %s1640_s30  }
  0x63   : > { %s1470_s9 = scalar_select %p41_p12, %s1209_s23, %s1641_s14  }
  0x64   : > { %s1472_s18 = scalar_lea.sflag [#allocation4], %s222_s12  ;;  %s1073_s15 = scalar_lea.hbm %s1458_s28, 256 }
  0x65   : > { %p1074_p11 = scmp.ne.s32.totalorder %s1458_s28, %s1073_s15  ;;  %p1075_p13 = pneg %p1383_p7 }
  0x66   : > { %s1078_s29 = scalar_lea.hbm %s1606_s0, 1536  ;;  %p1079_p8 = scmp.lt.u32.totalorder %s1458_s28, %s1606_s0 }
  0x67   : > { %p1076_p1 = pnand %p1075_p13, %p1074_p11  ;;  %p1080_p4 = scmp.lt.u32.totalorder %s1078_s29, %s1073_s15 }
  0x68   : > { %p1082_p6 = scmp.lt.u32.totalorder %s1073_s15, %s1458_s28 }
  0x69   : > { %p1077_p2 = pneg %p1076_p1  ;;  %p1081_p3 = por %p1080_p4, %p1079_p8 }
  0x6b   : > { %p1083_p9 = por %p1082_p6, %p1081_p3 }
  0x6d   : > { %p1084_p10 = pnand %p1083_p9, %p1077_p2 }
  0x6f   : > { %1087 = shalt.err (!%p1084_p10)
}
  0x70   : > { %s1088_s12 = scalar_lea.vmem %s1460_s6, 256  ;;  %s1235_s30 = smov [#allocation3]  }
  0x71   : > { %p1089_p5 = scmp.ne.s32.totalorder %s1460_s6, %s1088_s12  ;;  %s1093_s14 = sshll.u32 %s1235_s30, 4  ;;  %s1094_s14 = int_to_ptr.vmem [resolvable:$false] %s1093_s14 }
  0x72   : > { %s1095_s16 = scalar_lea.vmem %s1094_s14, 512  ;;  %p1096_p1 = scmp.lt.s32.totalorder %s1460_s6, %s1094_s14 }
  0x73   : > { %p1091_p12 = pnand %p1089_p5, %p1075_p13  ;;  %p1097_p8 = scmp.lt.s32.totalorder %s1095_s16, %s1088_s12 }
  0x75   : > { %p1092_p11 = pneg %p1091_p12  ;;  %p1098_p4 = por %p1097_p8, %p1096_p1 }
  0x77   : > { %p1099_p3 = pnand %p1098_p4, %p1092_p11 }
  0x79   : > { %1102 = shalt.err (!%p1099_p3)
}
  0x7a   : > { %s1236_s15 = smov 256   ;;  %s1237_s1 = smov 128  }
  0x7b   : > { %s1238_s29 = smov 8   ;;  %247 = sbr.rel (%p1366_p0) target bundleno = 874 (0x36a), region = 40 }
  0x7c   : > { %888 = dma.hbm_to_vmem [thread:$0]  (!%p1383_p7), %s1458_s28, 256, %s1460_s6, %s1472_s18, %s1236_s15, %s1237_s1, %s1238_s29  }
  0x7d   : > { %s249_s21 = sand.u32 (!%p1366_p0), 1, %s1205_s22   ;;  %p1642_p13 = scmp.ne.s32.totalorder (!%p1366_p0), %s1630_s10, 0 }
  0x7e   : > { %s1503_s5 = sshll.u32 (!%p1366_p0), %s249_s21, 4  ;;  %s250_s12 = scalar_lea.sflag (!%p1366_p0), [#allocation4], %s249_s21 }
  0x7f   : > { %s253_s30 = scalar_lea.vmem (!%p1366_p0), [#allocation3], %s1503_s5 }
  0x82   : > { %1176 = dma.done.wait (%p1642_p13), %s250_s12, 256  }
  0x83   : > { %1178 = vsyncadd (%p1642_p13), %s250_s12, 4294967040  ;;  %p1643_p2 = scmp.ne.s32.totalorder %s1628_s7, 0 }
  0x85   : > { %1180 = dma.done.wait (%p1643_p2), [#allocation7], 3072  }
  0x86   : > { %1182 = vsyncadd (%p1643_p2), [#allocation7], 4294964224  ;;  %s285_s13 = sand.u32 1, %s1193_s19   ;;  %p747_p0 = scmp.ne.s32.totalorder %s1213_s24, 0 }
  0x87   : > { %s746_s17 = sshll.u32 %s285_s13, 4  ;;  %v1239_v0 = vmov (!%p747_p0), 0.0  }
  0x88   : > { %s1517_s6 = scalar_lea.vmem [#allocation9], %s746_s17  ;;  %294 = sbr.rel (%p747_p0) target bundleno = 143 (0x8f), region = 56  ;;  %295 = vst [vmem:[#allocation2] sm:$0xff] (!%p747_p0), %v1239_v0  ;;  %296 = vst [vmem:[#allocation2 + $0x8] sm:$0xff] (!%p747_p0), %v1239_v0 }
  0x8f PF: > { %s748_s10 = sshll.u32 %s1213_s24, 7  ;;  %v1240_v1 = vmov 0.0   ;;  %vm1241_vm0 = vmmov 0   ;;  %v299_v7 = vlaneseq  ;;  %v297_v14 = vld [vmem:[%s253_s30] sm:$0xff]  ;;  %v298_v15 = vld [vmem:[%s253_s30 + $0x8] sm:$0xff]  ;;  %p761_p7 = scmp.ne.s32.totalorder %s1213_s24, 1 }
  0x90   : > { %806 = vmatprep.subr.bf16.mxu0 %v1240_v1  ;;  %s308_s7 = sshra.s32 %s748_s10, 3  ;;  %822 = vmatprep.mubr.msk.bf16.mxu0 %vm1241_vm0, %v1240_v1  ;;  %v302_v10 = vstv %s748_s10  ;;  %v759_v16 = vpack.c.bf16 %v298_v15, %v297_v14  ;;  %v328_v17 = vld [vmem:[#allocation2] sm:$0xff]  ;;  %v329_v19 = vld [vmem:[#allocation2 + $0x8] sm:$0xff]  ;;  %v1009_v25 = vld [vmem:[#allocation8] sm:$0xff] (!%p761_p7)   ;;  %v1242_v26 = vmov (!%p761_p7), 0.0   ;;  %vm1243_vm3 = vmmov (!%p761_p7), 0  }
  0x91   : > { %s749_s28 = sshll.u32 %s308_s7, 2  ;;  %v300_v9 = vand.u32 127, %v299_v7  ;;  %846 = vmatprep.subr.bf16.mxu1 (!%p761_p7), %v1242_v26  ;;  %v1010_v27 = vld [vmem:[#allocation8 + $0x8] sm:$0xff] (!%p761_p7)   ;;  %862 = vmatprep.mubr.msk.bf16.mxu1 (!%p761_p7), %vm1243_vm3, %v1242_v26  ;;  %v1011_v28 = vld [vmem:[#allocation8 + $0x10] sm:$0xff] (!%p761_p7)   ;;  %v1012_v29 = vld [vmem:[#allocation8 + $0x18] sm:$0xff] (!%p761_p7)  }
  0x92   : > { %s311_s18 = scalar_lea.vmem [#allocation6], %s749_s28  ;;  %847 = vmatpush3.bf16.msra.mxu1 (!%p761_p7), %v1009_v25  ;;  %v1013_v30 = vld [vmem:[#allocation8 + $0x20] sm:$0xff] (!%p761_p7)   ;;  %v1014_v31 = vld [vmem:[#allocation8 + $0x28] sm:$0xff] (!%p761_p7)   ;;  %v762_v34 = vld [vmem:[%s1608_s2] ss:$0 sm:$0xff] (!%p761_p7) }
  0x93   : > { %v1001_v2 = vld [vmem:[%s311_s18] sm:$0xff]   ;;  %v1002_v3 = vld [vmem:[%s311_s18 + $0x8] sm:$0xff]   ;;  %v1003_v4 = vld [vmem:[%s311_s18 + $0x10] sm:$0xff]   ;;  %v303_v12 = vadd.s32 %v302_v10, %v300_v9  ;;  %848 = vmatprep.subr.bf16.mxu1 (!%p761_p7), %v1242_v26 }
  0x94   : > { %807 = vmatpush3.bf16.msra.mxu0 %v1001_v2  ;;  %v1004_v5 = vld [vmem:[%s311_s18 + $0x18] sm:$0xff]   ;;  %v1005_v6 = vld [vmem:[%s311_s18 + $0x20] sm:$0xff]   ;;  %v1006_v8 = vld [vmem:[%s311_s18 + $0x28] sm:$0xff]  }
  0x95   : > { %808 = vmatprep.subr.bf16.mxu0 %v1240_v1  ;;  %v1007_v11 = vld [vmem:[%s311_s18 + $0x30] sm:$0xff]   ;;  %v1008_v13 = vld [vmem:[%s311_s18 + $0x38] sm:$0xff]   ;;  %vm304_vm1 = vcmp.lt.s32.totalorder %v303_v12, 192  ;;  %v1015_v37 = vld [vmem:[#allocation8 + $0x30] sm:$0xff] (!%p761_p7)  }
  0x96   : > { %vm758_vm2 = vmpackc.low %vm304_vm1, %vm304_vm1  ;;  %849 = vmatpush3.bf16.msra.mxu1 (!%p761_p7), %v1010_v27  ;;  %v1016_v40 = vld [vmem:[#allocation8 + $0x38] sm:$0xff] (!%p761_p7)   ;;  %v763_v42 = vld [vmem:[%s1610_s4] ss:$0 sm:$0xff] (!%p761_p7) }
  0x97   : > { %850 = vmatprep.subr.bf16.mxu1 (!%p761_p7), %v1242_v26 }
  0x98   : > { %809 = vmatpush3.bf16.msra.mxu0 %v1002_v3 }
  0x99   : > { %810 = vmatprep.subr.bf16.mxu0 %v1240_v1 }
  0x9a   : > { %851 = vmatpush3.bf16.msra.mxu1 (!%p761_p7), %v1011_v28 }
  0x9b   : > { %852 = vmatprep.subr.bf16.mxu1 (!%p761_p7), %v1242_v26 }
  0x9c   : > { %811 = vmatpush3.bf16.msra.mxu0 %v1003_v4 }
  0x9d   : > { %812 = vmatprep.subr.bf16.mxu0 %v1240_v1 }
  0x9e   : > { %853 = vmatpush3.bf16.msra.mxu1 (!%p761_p7), %v1012_v29 }
  0x9f   : > { %854 = vmatprep.subr.bf16.mxu1 (!%p761_p7), %v1242_v26 }
  0xa0   : > { %813 = vmatpush3.bf16.msra.mxu0 %v1004_v5 }
  0xa1   : > { %814 = vmatprep.subr.bf16.mxu0 %v1240_v1 }
  0xa2   : > { %855 = vmatpush3.bf16.msra.mxu1 (!%p761_p7), %v1013_v30 }
  0xa3   : > { %856 = vmatprep.subr.bf16.mxu1 (!%p761_p7), %v1242_v26 }
  0xa4   : > { %815 = vmatpush3.bf16.msra.mxu0 %v1005_v6 }
  0xa5   : > { %816 = vmatprep.subr.bf16.mxu0 %v1240_v1 }
  0xa6   : > { %857 = vmatpush3.bf16.msra.mxu1 (!%p761_p7), %v1014_v31 }
  0xa7   : > { %858 = vmatprep.subr.bf16.mxu1 (!%p761_p7), %v1242_v26 }
  0xa8   : > { %817 = vmatpush3.bf16.msra.mxu0 %v1006_v8 }
  0xa9   : > { %818 = vmatprep.subr.bf16.mxu0 %v1240_v1 }
  0xaa   : > { %859 = vmatpush3.bf16.msra.mxu1 (!%p761_p7), %v1015_v37 }
  0xab   : > { %860 = vmatprep.subr.bf16.mxu1 (!%p761_p7), %v1242_v26 }
  0xac   : > { %819 = vmatpush3.bf16.msra.mxu0 %v1007_v11 }
  0xad   : > { %820 = vmatprep.subr.bf16.mxu0 %v1240_v1 }
  0xae   : > { %861 = vmatpush3.bf16.msra.mxu1 (!%p761_p7), %v1016_v40 }
  0xb0   : > { %821 = vmatpush3.bf16.msra.mxu0 %v1008_v13 }
  0xb1   : > { %826 = vmatprep.subr.bf16.mxu0 (!%p761_p7), %v1242_v26 }
  0xb3   : > { %823 = vmatmul.mubr.msk.bf16.vlgmr.msra.gmra.mrb[0].mxu0 %vm758_vm2, %v759_v16 }
  0xb4   : > { %827 = vmatpush3.bf16.msra.mxu0 (!%p761_p7), %v1009_v25  ;;  %842 = vmatprep.mubr.msk.bf16.mxu0 (!%p761_p7), %vm1243_vm3, %v1242_v26 }
  0xb5   : > { %828 = vmatprep.subr.bf16.mxu0 (!%p761_p7), %v1242_v26 }
  0xb8   : > { %829 = vmatpush3.bf16.msra.mxu0 (!%p761_p7), %v1010_v27 }
  0xb9   : > { %830 = vmatprep.subr.bf16.mxu0 (!%p761_p7), %v1242_v26 }
  0xbc   : > { %831 = vmatpush3.bf16.msra.mxu0 (!%p761_p7), %v1011_v28 }
  0xbd   : > { %832 = vmatprep.subr.bf16.mxu0 (!%p761_p7), %v1242_v26 }
  0xc0   : > { %833 = vmatpush3.bf16.msra.mxu0 (!%p761_p7), %v1012_v29 }
  0xc1   : > { %834 = vmatprep.subr.bf16.mxu0 (!%p761_p7), %v1242_v26 }
  0xc4   : > { %835 = vmatpush3.bf16.msra.mxu0 (!%p761_p7), %v1013_v30 }
  0xc5   : > { %836 = vmatprep.subr.bf16.mxu0 (!%p761_p7), %v1242_v26 }
  0xc8   : > { %837 = vmatpush3.bf16.msra.mxu0 (!%p761_p7), %v1014_v31 }
  0xc9   : > { %838 = vmatprep.subr.bf16.mxu0 (!%p761_p7), %v1242_v26 }
  0xcc   : > { %839 = vmatpush3.bf16.msra.mxu0 (!%p761_p7), %v1015_v37 }
  0xcd   : > { %840 = vmatprep.subr.bf16.mxu0 (!%p761_p7), %v1242_v26 }
  0xd0   : > { %841 = vmatpush3.bf16.msra.mxu0 (!%p761_p7), %v1016_v40 }
 0x185   : > { %426 = sbr.rel (%p761_p7) target bundleno = 846 (0x34e), region = 60 }
 0x186   : > { %v412_v18 = vpop.f32.mrb[0].mxu0 }
 0x187   : > { %v419_v20 = vadd.f32 %v412_v18, %v328_v17  ;;  %v824_v21 = vpop.f32.mrb[1].mxu0 }
 0x188   : > { %v415_v22 = vpop.f32.mrb[2].mxu0 }
 0x189   : > { %421 = vst [vmem:[#allocation2] sm:$0xff] %v419_v20  ;;  %v420_v23 = vadd.f32 %v415_v22, %v329_v19  ;;  %v825_v24 = vpop.f32.mrb[3].mxu0 }
 0x18b   : > { %422 = vst [vmem:[#allocation2 + $0x8] sm:$0xff] %v420_v23 }
 0x190   : > { %v427_v32 = vld [vmem:[#allocation2] sm:$0xff] }
 0x191   : > { %v436_v35 = vadd.f32 %v762_v34, %v427_v32 }
 0x192   : > { %v428_v33 = vld [vmem:[#allocation2 + $0x8] sm:$0xff] }
 0x193   : > { %v437_v36 = vadd.f32 %v762_v34, %v428_v33  ;;  %v465_v38 = vmax.f32 %v436_v35, 0.0 }
 0x195   : > { %v466_v39 = vmax.f32 %v437_v36, 0.0 }
 0x197   : > { %v467_v41 = vpack.c.bf16 %v466_v39, %v465_v38 }
 0x199   : > { %843 = vmatmul.mubr.bf16.vlgmr.msra.gmra.mrb[0].mxu0 %v467_v41 }
 0x26c   : > { %v550_v43 = vpop.f32.mrb[0].mxu0 }
 0x26d   : > { %v551_v44 = vadd.f32 %v763_v42, %v550_v43  ;;  %v844_v45 = vpop.f32.mrb[1].mxu0 }
 0x26e   : > { %v553_v46 = vpop.f32.mrb[2].mxu0 }
 0x26f   : > { %v554_v47 = vadd.f32 %v763_v42, %v553_v46  ;;  %v845_v48 = vpop.f32.mrb[3].mxu0  ;;  %v561_v49 = vmax.f32 %v551_v44, 0.0 }
 0x271   : > { %v562_v50 = vmax.f32 %v554_v47, 0.0 }
 0x273   : > { %v563_v51 = vpack.c.bf16 %v562_v50, %v561_v49 }
 0x275   : > { %863 = vmatmul.mubr.bf16.vlgmr.msra.gmra.mrb[0].mxu1 %v563_v51 }
 0x348   : > { %v598_v52 = vpop.f32.mrb[0].mxu1 }
 0x349   : > { %v599_v53 = vadd.f32 %v763_v42, %v598_v52  ;;  %v864_v54 = vpop.f32.mrb[1].mxu1 }
 0x34a   : > { %v601_v55 = vpop.f32.mrb[2].mxu1 }
 0x34b   : > { %605 = vst [vmem:[#allocation2] sm:$0xff] %v599_v53  ;;  %609 = vst [vmem:[%s1517_s6] sm:$0xff] %v599_v53  ;;  %v602_v56 = vadd.f32 %v763_v42, %v601_v55  ;;  %v865_v57 = vpop.f32.mrb[3].mxu1 }
 0x34d   : > { %606 = vst [vmem:[#allocation2 + $0x8] sm:$0xff] %v602_v56  ;;  %610 = vst [vmem:[%s1517_s6 + $0x8] sm:$0xff] %v602_v56 }
 0x34e PF: > { %s1644_s1 = sld [smem:[#allocation15_spill]]  ;;  %s778_s29 = sshll.u32 %s1217_s25, 8 }
 0x34f   : > { %s1645_s12 = sld [smem:[#allocation19_spill]]  ;;  %s625_s17 = sshll.u32 %s1517_s6, 4  ;;  %s1541_s17 = int_to_ptr.vmem [resolvable:$true] %s625_s17 }
 0x350   : > { %s1545_s10 = scalar_lea.sflag [#allocation5], %s285_s13  ;;  %s1103_s7 = scalar_lea.vmem %s1541_s17, 256 }
 0x351   : > { %p1104_p6 = scmp.ne.s32.totalorder %s1541_s17, %s1103_s7  ;;  %s1244_s25 = smov [#allocation9]  }
 0x352   : > { %s1107_s28 = sshll.u32 %s1244_s25, 4  ;;  %s1108_s28 = int_to_ptr.vmem [resolvable:$false] %s1107_s28 }
 0x353   : > { %s1109_s18 = scalar_lea.vmem %s1108_s28, 512  ;;  %p1110_p12 = scmp.lt.s32.totalorder %s1541_s17, %s1108_s28 }
 0x354   : > { %p1646_p9 = scmp.ne.s32.totalorder %s1644_s1, 0  ;;  %p1111_p11 = scmp.lt.s32.totalorder %s1109_s18, %s1103_s7 }
 0x355   : > { %s1538_s30 = scalar_lea.hbm %s1645_s12, %s778_s29 }
 0x356   : > { %p1105_p10 = pnand %p1104_p6, %p1646_p9  ;;  %p1112_p1 = por %p1111_p11, %p1110_p12 }
 0x358   : > { %p1106_p5 = pneg %p1105_p10 }
 0x35a   : > { %p1113_p8 = pnand %p1112_p1, %p1106_p5 }
 0x35c   : > { %1116 = shalt.err (!%p1113_p8)
}
 0x35d   : > { %s1117_s13 = scalar_lea.hbm %s1538_s30, 256  ;;  %s1121_s14 = scalar_lea.hbm %s1645_s12, 768 }
 0x35e   : > { %p1118_p4 = scmp.ne.s32.totalorder %s1538_s30, %s1117_s13  ;;  %p1122_p2 = scmp.lt.u32.totalorder %s1538_s30, %s1645_s12 }
 0x35f   : > { %p1123_p0 = scmp.lt.u32.totalorder %s1121_s14, %s1117_s13  ;;  %p1125_p6 = scmp.lt.u32.totalorder %s1117_s13, %s1538_s30 }
 0x360   : > { %p1119_p3 = pnand %p1118_p4, %p1646_p9 }
 0x361   : > { %p1124_p7 = por %p1123_p0, %p1122_p2 }
 0x362   : > { %p1120_p13 = pneg %p1119_p3 }
 0x363   : > { %p1126_p10 = por %p1125_p6, %p1124_p7 }
 0x365   : > { %p1127_p5 = pnand %p1126_p10, %p1120_p13 }
 0x367   : > { %1130 = shalt.err (!%p1127_p5)
}
 0x368   : > { %s1245_s29 = smov 128   ;;  %s1246_s21 = smov 8  }
 0x369   : > { %876 = dma.vmem_to_hbm [thread:$0]  (%p1646_p9), %s1541_s17, 256, %s1538_s30, %s1545_s10, %s1245_s29, %s1245_s29, %s1246_s21  }
 0x36a PF: > { %s1647_s5 = sld [smem:[#allocation14_spill]]  ;;  %s1648_s7 = sld [smem:[#allocation13_spill]] }
 0x36b   : > { %s1649_s25 = sld [smem:[#allocation16_spill]] }
 0x370   : > { %p898_p12 = scmp.ge.s32.totalorder %s1647_s5, 2  ;;  %s640_s28 = sand.u32 1, %s1648_s7  }
 0x371   : > { %p1650_p11 = scmp.ne.s32.totalorder %s1649_s25, 0  ;;  %s641_s18 = scalar_lea.sflag [#allocation5], %s640_s28 }
 0x373   : > { %p890_p1 = pnand %p898_p12, %p1650_p11 }
 0x375   : > { %1184 = dma.done.wait (!%p890_p1), %s641_s18, 256  }
 0x376   : > { %1186 = vsyncadd (!%p890_p1), %s641_s18, 4294967040  ;;  %s22_s28 = sadd.s32 1, %s1647_s5   ;;  %s1651_s18 = smov %s1193_s19 }
 0x377   : > { %p19_p8 = scmp.ge.s32.totalorder %s22_s28, 8   ;;  %s1652_s19 = smov %s1197_s20 }
 0x378   : > { %s1653_s20 = smov %s1465_s3  ;;  %s1654_s21 = smov %s1205_s22 }
 0x379   : > { %s1655_s22 = smov %s1209_s23  ;;  %s1656_s23 = smov %s1470_s9 }
 0x37a   : > { %s1657_s24 = smov %s1221_s26  ;;  %s1658_s25 = smov %s1225_s27 }
 0x37b   : > { %s1659_s26 = smov %s1662_s11  ;;  %s1660_s27 = smov %s1666_s8 }
 0x37c   :  { %21 = sbr.rel (!%p19_p8) target bundleno = 14 (0xe), region = 102 }
 0x383   :  { %646 = vsyncpa [#allocation4], 1 }
 0x384   :  { %648 = vsyncpa [#allocation4 + $0x1], 1 }
 0x385   :  { %649 = vsyncpa [#allocation7], 1 }
 0x386   :  { %650 = vsyncpa [#allocation5], 1 }
 0x387   :  { %652 = vsyncpa [#allocation5 + $0x1], 1 }

</bundles_post_ra>
